<compile_context>
chip_gen: v5e
topology: v5e:2x2
jax: 0.10.0
libtpu: 0.0.40
codegen_flags: <defaults>
</compile_context>

<pallas_src>
import functools

import jax
import jax.numpy as jnp
from jax.experimental import pallas as pl
from jax.experimental.pallas import tpu as pltpu


# --------------------------------------------------------------------------- #
# Kernel
# --------------------------------------------------------------------------- #
def _value_mlp_kernel(x_ref, *rest, n_linear):
    """Fused MLP (n_linear Linear layers, tanh between them) on one batch tile.

    rest = (w1, b1, w2, b2, ..., wL, bL, out_ref)
    """
    out_ref = rest[-1]
    param_refs = rest[:-1]

    h = x_ref[...]
    for li in range(n_linear):
        w = param_refs[2 * li][...]
        b = param_refs[2 * li + 1][...]          # (1, out) f32, broadcasts over rows
        if w.dtype != h.dtype:
            h = h.astype(w.dtype)                # bf16 weights -> feed MXU bf16 inputs
        z = jnp.dot(h, w, preferred_element_type=jnp.float32) + b
        h = jnp.tanh(z) if li < n_linear - 1 else z
    out_ref[...] = h.astype(out_ref.dtype)


# --------------------------------------------------------------------------- #
# Host-side wrapper
# --------------------------------------------------------------------------- #
def _round_up(x, m):
    return ((x + m - 1) // m) * m


def _choose_tile(batch, requested_tile):
    """Pick an 8-aligned batch tile; prefer >=2 grid steps for big batches
    so the parallel batch axis can be sharded across both v7x TensorCores."""
    requested_tile = max(8, _round_up(int(requested_tile), 8))
    n_steps = pl.cdiv(batch, requested_tile)
    if n_steps == 1 and batch >= 256:
        n_steps = 2
    tile = _round_up(pl.cdiv(batch, n_steps), 8)
    n_steps = pl.cdiv(batch, tile)
    return tile, n_steps


def _run_value_mlp(obs, params, *, batch_tile=512):
    """obs: (B, ob_dim) f32.  params: list of (w, b) with w:(in,out), b:(1,out) f32."""
    obs = obs.astype(jnp.float32)
    B, ob_dim = obs.shape
    n_linear = len(params)

    tile, n_steps = _choose_tile(B, batch_tile)
    B_pad = tile * n_steps
    if B_pad != B:
        obs = jnp.pad(obs, ((0, B_pad - B), (0, 0)))

    kernel = functools.partial(_value_mlp_kernel, n_linear=n_linear)

    # Parameters are small and their index_map is constant: they are DMA'd once
    # and stay resident in VMEM across all grid steps.
    const_spec = lambda shape: pl.BlockSpec(shape, lambda i: (0, 0))

    in_specs = [pl.BlockSpec((tile, ob_dim), lambda i: (i, 0))]   # obs tile
    flat_params = []
    for (w, b) in params:
        in_specs.append(const_spec(w.shape))
        in_specs.append(const_spec(b.shape))
        flat_params.extend([w, b])

    out = pl.pallas_call(
        kernel,
        out_shape=jax.ShapeDtypeStruct((B_pad, 1), jnp.float32),
        grid_spec=pltpu.PrefetchScalarGridSpec(
            num_scalar_prefetch=0,
            grid=(n_steps,),
            in_specs=in_specs,
            out_specs=pl.BlockSpec((tile, 1), lambda i: (i, 0)),
        ),
        compiler_params=pltpu.CompilerParams(
            dimension_semantics=("parallel",)),
    )(obs, *flat_params)

    return out[:B]


# --------------------------------------------------------------------------- #
# Parameter init (mimics PyTorch nn.Linear default: U[-1/sqrt(fan_in), +1/sqrt(fan_in)])
# --------------------------------------------------------------------------- #
def init_value_mlp_params(key, ob_dim, n_layers, layer_size,
                          param_dtype=jnp.float32):
    dims = [ob_dim] + [layer_size] * n_layers + [1]
    n_linear = len(dims) - 1
    keys = jax.random.split(key, 2 * n_linear)
    params = []
    for li in range(n_linear):
        fan_in, fan_out = dims[li], dims[li + 1]
        bound = 1.0 / jnp.sqrt(float(fan_in))
        w = jax.random.uniform(keys[2 * li], (fan_in, fan_out), jnp.float32,
                               -bound, bound).astype(param_dtype)
        b = jax.random.uniform(keys[2 * li + 1], (1, fan_out), jnp.float32,
                               -bound, bound)                     # bias stays f32
        params.append((w, b))
    return params


class ValueCriticPallas:
    """JAX/Pallas equivalent of ValueCritic.forward (value = MLP(obs))."""

    def __init__(self, ob_dim, n_layers, layer_size, learning_rate, key,
                 param_dtype=jnp.float32):
        self.params = init_value_mlp_params(key, ob_dim, n_layers, layer_size,
                                            param_dtype=param_dtype)
        self.learning_rate = learning_rate
        # TODO(synk): ValueCritic.update (MSE loss backward + Adam step) is a
        # training-side op and is not implemented as a Pallas kernel here.

    def forward(self, obs, batch_tile=512):
        return _run_value_mlp(obs, self.params, batch_tile=batch_tile)


# --------------------------------------------------------------------------- #
# Pure-JAX reference
# --------------------------------------------------------------------------- #
def _reference_forward(obs, params):
    h = obs.astype(jnp.float32)
    n_linear = len(params)
    for li, (w, b) in enumerate(params):
        if w.dtype != h.dtype:
            h = h.astype(w.dtype)
        z = jnp.dot(h, w, preferred_element_type=jnp.float32) + b
        h = jnp.tanh(z) if li < n_linear - 1 else z
    return h


if __name__ == "__main__":
    key = jax.random.PRNGKey(0)
    k_param, k_obs = jax.random.split(key)

    ob_dim, n_layers, layer_size = 16, 2, 32

    critic = ValueCriticPallas(ob_dim=ob_dim, n_layers=n_layers,
                               layer_size=layer_size, learning_rate=1e-3,
                               key=k_param)

    # Small, non-multiple-of-8 batch: exercises the cdiv + padding path.
    B = 200
    obs = jax.random.normal(k_obs, (B, ob_dim), jnp.float32)
    vals = jax.block_until_ready(critic.forward(obs))
    ref = _reference_forward(obs, critic.params)
    assert vals.shape == (B, 1)
    assert jnp.allclose(vals, ref, atol=1e-5, rtol=1e-5), "f32 value mismatch"

    # Larger batch: default batch_tile=512 gives a 2-step "parallel" grid
    # (keeps both TensorCores busy on v7x; no-op on v5e/v6e).
    B2 = 1024
    obs2 = jax.random.normal(jax.random.PRNGKey(1), (B2, ob_dim), jnp.float32)
    vals2 = jax.block_until_ready(critic.forward(obs2))
    ref2 = _reference_forward(obs2, critic.params)
    assert vals2.shape == (B2, 1)
    assert jnp.allclose(vals2, ref2, atol=1e-5, rtol=1e-5), "f32 large-batch mismatch"

    # bf16-weight variant (MXU-native input dtype on v6e/v7x); accumulation f32.
    critic_bf16 = ValueCriticPallas(ob_dim=ob_dim, n_layers=n_layers,
                                    layer_size=layer_size, learning_rate=1e-3,
                                    key=k_param, param_dtype=jnp.bfloat16)
    vals_bf = jax.block_until_ready(critic_bf16.forward(obs2))
    ref_bf = _reference_forward(obs2, critic_bf16.params)
    assert jnp.allclose(vals_bf, ref_bf, atol=2e-2, rtol=2e-2), "bf16 value mismatch"

    print("KERNEL_OK")
</pallas_src>

<mosaic_0001>
module attributes {stable_mosaic.version = 11 : i64} {
  func.func @_value_mlp_kernel(%arg0: i32, %arg1: memref<200x16xf32, #tpu.memory_space<vmem>>, %arg2: memref<16x32xf32, #tpu.memory_space<vmem>>, %arg3: memref<1x32xf32, #tpu.memory_space<vmem>>, %arg4: memref<32x32xf32, #tpu.memory_space<vmem>>, %arg5: memref<1x32xf32, #tpu.memory_space<vmem>>, %arg6: memref<32x1xf32, #tpu.memory_space<vmem>>, %arg7: memref<1x1xf32, #tpu.memory_space<vmem>>, %arg8: memref<200x1xf32, #tpu.memory_space<vmem>>) attributes {dimension_semantics = [#tpu.dimension_semantics<parallel>], iteration_bounds = array<i64: 1>, scalar_prefetch = 0 : i64, scratch_operands = 0 : i64, tpu.core_type = #tpu.core_type<tc>, window_params = [{transform_indices = @transform_0, window_bounds = array<i64: 200, 16>}, {pipeline_mode = #tpu.pipeline_mode<synchronous>, transform_indices = @transform_1, window_bounds = array<i64: 16, 32>}, {pipeline_mode = #tpu.pipeline_mode<synchronous>, transform_indices = @transform_2, window_bounds = array<i64: 1, 32>}, {pipeline_mode = #tpu.pipeline_mode<synchronous>, transform_indices = @transform_3, window_bounds = array<i64: 32, 32>}, {pipeline_mode = #tpu.pipeline_mode<synchronous>, transform_indices = @transform_4, window_bounds = array<i64: 1, 32>}, {pipeline_mode = #tpu.pipeline_mode<synchronous>, transform_indices = @transform_5, window_bounds = array<i64: 32, 1>}, {pipeline_mode = #tpu.pipeline_mode<synchronous>, transform_indices = @transform_6, window_bounds = array<i64: 1, 1>}, {transform_indices = @transform_7, window_bounds = array<i64: 200, 1>}]} {
    %c0 = arith.constant 0 : index
    %c0_0 = arith.constant 0 : index
    %0 = vector.load %arg1[%c0, %c0_0] : memref<200x16xf32, #tpu.memory_space<vmem>>, vector<200x16xf32>
    %c0_1 = arith.constant 0 : index
    %c0_2 = arith.constant 0 : index
    %1 = vector.load %arg2[%c0_1, %c0_2] : memref<16x32xf32, #tpu.memory_space<vmem>>, vector<16x32xf32>
    %c0_3 = arith.constant 0 : index
    %c0_4 = arith.constant 0 : index
    %2 = vector.load %arg3[%c0_3, %c0_4] : memref<1x32xf32, #tpu.memory_space<vmem>>, vector<1x32xf32>
    %cst = arith.constant dense<0.000000e+00> : vector<200x32xf32>
    %3 = tpu.matmul %0, %1, %cst {dimension_numbers = #tpu.dot_dimension_numbers<[1], [0], [0], [1], [0, 0, 1, 1], [], []>} : vector<200x16xf32>, vector<16x32xf32>, vector<200x32xf32> -> vector<200x32xf32>
    %4 = vector.broadcast %2 : vector<1x32xf32> to vector<200x32xf32>
    %5 = arith.addf %3, %4 : vector<200x32xf32>
    %6 = math.tanh %5 : vector<200x32xf32>
    %c0_5 = arith.constant 0 : index
    %c0_6 = arith.constant 0 : index
    %7 = vector.load %arg4[%c0_5, %c0_6] : memref<32x32xf32, #tpu.memory_space<vmem>>, vector<32x32xf32>
    %c0_7 = arith.constant 0 : index
    %c0_8 = arith.constant 0 : index
    %8 = vector.load %arg5[%c0_7, %c0_8] : memref<1x32xf32, #tpu.memory_space<vmem>>, vector<1x32xf32>
    %cst_9 = arith.constant dense<0.000000e+00> : vector<200x32xf32>
    %9 = tpu.matmul %6, %7, %cst_9 {dimension_numbers = #tpu.dot_dimension_numbers<[1], [0], [0], [1], [0, 0, 1, 1], [], []>} : vector<200x32xf32>, vector<32x32xf32>, vector<200x32xf32> -> vector<200x32xf32>
    %10 = vector.broadcast %8 : vector<1x32xf32> to vector<200x32xf32>
    %11 = arith.addf %9, %10 : vector<200x32xf32>
    %12 = math.tanh %11 : vector<200x32xf32>
    %c0_10 = arith.constant 0 : index
    %c0_11 = arith.constant 0 : index
    %13 = vector.load %arg6[%c0_10, %c0_11] : memref<32x1xf32, #tpu.memory_space<vmem>>, vector<32x1xf32>
    %c0_12 = arith.constant 0 : index
    %c0_13 = arith.constant 0 : index
    %14 = vector.load %arg7[%c0_12, %c0_13] : memref<1x1xf32, #tpu.memory_space<vmem>>, vector<1x1xf32>
    %cst_14 = arith.constant dense<0.000000e+00> : vector<200x1xf32>
    %15 = tpu.matmul %12, %13, %cst_14 {dimension_numbers = #tpu.dot_dimension_numbers<[1], [0], [0], [1], [0, 0, 1, 1], [], []>} : vector<200x32xf32>, vector<32x1xf32>, vector<200x1xf32> -> vector<200x1xf32>
    %16 = vector.broadcast %14 : vector<1x1xf32> to vector<200x1xf32>
    %17 = arith.addf %15, %16 : vector<200x1xf32>
    %c0_15 = arith.constant 0 : index
    %c0_16 = arith.constant 0 : index
    %18 = vector.load %arg8[%c0_15, %c0_16] : memref<200x1xf32, #tpu.memory_space<vmem>>, vector<200x1xf32>
    tpu.vector_store %arg8[%c0_15, %c0_16], %17 {strides = array<i32>} : memref<200x1xf32, #tpu.memory_space<vmem>>, vector<200x1xf32>,
    return
  }
  func.func @transform_0(%arg0: i32) -> (i32, i32) {
    %c0_i32 = arith.constant 0 : i32
    %c0_i32_0 = arith.constant 0 : i32
    return %arg0, %c0_i32 : i32, i32
  }
  func.func @transform_1(%arg0: i32) -> (i32, i32) {
    %c0_i32 = arith.constant 0 : i32
    %c0_i32_0 = arith.constant 0 : i32
    %c0_i32_1 = arith.constant 0 : i32
    return %c0_i32, %c0_i32_0 : i32, i32
  }
  func.func @transform_2(%arg0: i32) -> (i32, i32) {
    %c0_i32 = arith.constant 0 : i32
    %c0_i32_0 = arith.constant 0 : i32
    %c0_i32_1 = arith.constant 0 : i32
    return %c0_i32, %c0_i32_0 : i32, i32
  }
  func.func @transform_3(%arg0: i32) -> (i32, i32) {
    %c0_i32 = arith.constant 0 : i32
    %c0_i32_0 = arith.constant 0 : i32
    %c0_i32_1 = arith.constant 0 : i32
    return %c0_i32, %c0_i32_0 : i32, i32
  }
  func.func @transform_4(%arg0: i32) -> (i32, i32) {
    %c0_i32 = arith.constant 0 : i32
    %c0_i32_0 = arith.constant 0 : i32
    %c0_i32_1 = arith.constant 0 : i32
    return %c0_i32, %c0_i32_0 : i32, i32
  }
  func.func @transform_5(%arg0: i32) -> (i32, i32) {
    %c0_i32 = arith.constant 0 : i32
    %c0_i32_0 = arith.constant 0 : i32
    %c0_i32_1 = arith.constant 0 : i32
    return %c0_i32, %c0_i32_0 : i32, i32
  }
  func.func @transform_6(%arg0: i32) -> (i32, i32) {
    %c0_i32 = arith.constant 0 : i32
    %c0_i32_0 = arith.constant 0 : i32
    %c0_i32_1 = arith.constant 0 : i32
    return %c0_i32, %c0_i32_0 : i32, i32
  }
  func.func @transform_7(%arg0: i32) -> (i32, i32) {
    %c0_i32 = arith.constant 0 : i32
    %c0_i32_0 = arith.constant 0 : i32
    return %arg0, %c0_i32 : i32, i32
  }
}

</mosaic_0001>

<bundles_post_ra>
// kernel: tpu_custom_call.1
= control target key start
LH: loop header
LB: loop body
LE: loop exit
PB: predicated region body
PF: predicated region fallthrough
CT: control target
= control target key end

     0   :  { %vm59_vm0 = vcmask 130048   ;;  %vm260_vm1 = vcmask 261120   ;;  %vm628_vm2 = vcmask 7168   ;;  %s1256_s1 = inlined_call_operand.vmem [shape: f32[16,32], index: 1, kind: input, shape index: {}]   ;;  %s1257_s0 = inlined_call_operand.vmem [shape: f32[200,16], index: 0, kind: input, shape index: {}]   ;;  %s1258_s2 = inlined_call_operand.vmem [shape: f32[1,32], index: 2, kind: input, shape index: {}]   ;;  %s1259_s3 = inlined_call_operand.vmem [shape: f32[32,32], index: 3, kind: input, shape index: {}]   ;;  %s1260_s4 = inlined_call_operand.vmem [shape: f32[1,32], index: 4, kind: input, shape index: {}]   ;;  %s1261_s5 = inlined_call_operand.vmem [shape: f32[32,1], index: 5, kind: input, shape index: {}]   ;;  %s1262_s6 = inlined_call_operand.<no memory space> [shape: f32[1,1], index: 6, kind: input, shape index: {}]   ;;  %s1263_s7 = inlined_call_operand.vmem [shape: f32[200,1], index: 7, kind: output, shape index: {}]  }
   0x1   :  { %v54_v0 = vld [vmem:[%s1256_s1 + $0x8] sm:$0xff]  ;;  %v53_v1 = vld [vmem:[%s1256_s1] sm:$0xff]  ;;  %v30_v4 = vld [vmem:[%s1257_s0 + $0x10] sm:$0xff] }
   0x2   :  { %149 = vmatpush.msra.mxu0 %v54_v0  ;;  %v28_v2 = vld [vmem:[%s1257_s0] sm:$0xff]  ;;  %733 = vmatpush.msra.mxu3 %v54_v0  ;;  %v29_v3 = vld [vmem:[%s1257_s0 + $0x8] sm:$0xff]  ;;  %v31_v5 = vld [vmem:[%s1257_s0 + $0x18] sm:$0xff] }
   0x3   :  { %v32_v6 = vld [vmem:[%s1257_s0 + $0x20] sm:$0xff]  ;;  %v33_v7 = vld [vmem:[%s1257_s0 + $0x28] sm:$0xff]  ;;  %v34_v8 = vld [vmem:[%s1257_s0 + $0x30] sm:$0xff] }
   0x4   :  { %150 = vmatpush.msra.mxu0 %v53_v1  ;;  %734 = vmatpush.msra.mxu3 %v53_v1  ;;  %v35_v9 = vld [vmem:[%s1257_s0 + $0x38] sm:$0xff]  ;;  %v36_v11 = vld [vmem:[%s1257_s0 + $0x40] sm:$0xff]  ;;  %v37_v13 = vld [vmem:[%s1257_s0 + $0x48] sm:$0xff] }
   0x5   :  { %658 = vmatmul.msk.f32.vlgmr.msra.gmra.mxu0 %vm59_vm0, %v28_v2  ;;  %v47_v10 = vld [vmem:[%s1257_s0 + $0x98] sm:$0xff]  ;;  %v48_v12 = vld [vmem:[%s1257_s0 + $0xa0] sm:$0xff]  ;;  %v49_v14 = vld [vmem:[%s1257_s0 + $0xa8] sm:$0xff] }
   0x6   :  { %677 = vmatmul.msk.f32.vlgmr.msra.gmra.mxu3 %vm59_vm0, %v47_v10  ;;  %v38_v15 = vld [vmem:[%s1257_s0 + $0x50] sm:$0xff]  ;;  %v39_v17 = vld [vmem:[%s1257_s0 + $0x58] sm:$0xff]  ;;  %v40_v19 = vld [vmem:[%s1257_s0 + $0x60] sm:$0xff] }
   0x7   :  { %v50_v16 = vld [vmem:[%s1257_s0 + $0xb0] sm:$0xff]  ;;  %v51_v18 = vld [vmem:[%s1257_s0 + $0xb8] sm:$0xff]  ;;  %v52_v22 = vld [vmem:[%s1257_s0 + $0xc0] sm:$0xff] }
   0x8   :  { %v255_v20 = vld [vmem:[%s1259_s3 + $0x18] sm:$0xff]  ;;  %v254_v21 = vld [vmem:[%s1259_s3 + $0x10] sm:$0xff]  ;;  %v253_v23 = vld [vmem:[%s1259_s3 + $0x8] sm:$0xff] }
   0x9   :  { %348 = vmatpush.msra.mxu1 %v255_v20  ;;  %735 = vmatpush.msrb.mxu3 %v255_v20  ;;  %v41_v24 = vld [vmem:[%s1257_s0 + $0x68] sm:$0xff]  ;;  %v252_v25 = vld [vmem:[%s1259_s3] sm:$0xff]  ;;  %v42_v26 = vld [vmem:[%s1257_s0 + $0x70] sm:$0xff] }
   0xa   :  { %v43_v27 = vld [vmem:[%s1257_s0 + $0x78] sm:$0xff]  ;;  %v995_v28 = vld [vmem:[%s1258_s2] ss:$0 sm:$0xff]  ;;  %v45_v33 = vld [vmem:[%s1257_s0 + $0x88] sm:$0xff] }
   0xb   :  { %349 = vmatpush.msra.mxu1 %v254_v21  ;;  %736 = vmatpush.msrb.mxu3 %v254_v21  ;;  %v44_v30 = vld [vmem:[%s1257_s0 + $0x80] sm:$0xff]  ;;  %v46_v37 = vld [vmem:[%s1257_s0 + $0x90] sm:$0xff] }
   0xd   :  { %659 = vmatmul.msk.f32.gmra.mxu0 %vm59_vm0, %v29_v3  ;;  %350 = vmatpush.msra.mxu1 %v253_v23 }
   0xe   :  { %678 = vmatmul.msk.f32.gmra.mxu3 %vm59_vm0, %v48_v12 }
   0xf   :  { %351 = vmatpush.msra.mxu1 %v252_v25  ;;  %737 = vmatpush.msrb.mxu3 %v253_v23  ;;  %v456_v23 = vld [vmem:[%s1261_s5 + $0x18] sm:$0xff] }
  0x10   :  { %548 = vmatpush.msra.mxu2 %v456_v23 }
  0x11   :  { %738 = vmatpush.msrb.mxu3 %v252_v25 }
  0x13   :  { %739 = vmatpush.msra.mxu3 %v456_v23 }
  0x15   :  { %660 = vmatmul.msk.f32.gmra.mxu0 %vm59_vm0, %v30_v4 }
  0x16   :  { %679 = vmatmul.msk.f32.gmra.mxu3 %vm59_vm0, %v49_v14 }
  0x1d   :  { %661 = vmatmul.msk.f32.gmra.mxu0 %vm59_vm0, %v31_v5 }
  0x1e   :  { %680 = vmatmul.msk.f32.gmra.mxu3 %vm59_vm0, %v50_v16 }
  0x25   :  { %662 = vmatmul.msk.f32.gmra.mxu0 %vm59_vm0, %v32_v6 }
  0x26   :  { %681 = vmatmul.msk.f32.gmra.mxu3 %vm59_vm0, %v51_v18 }
  0x2d   :  { %663 = vmatmul.msk.f32.gmra.mxu0 %vm59_vm0, %v33_v7 }
  0x2e   :  { %682 = vmatmul.msk.f32.gmra.mxu3 %vm59_vm0, %v52_v22 }
  0x35   :  { %664 = vmatmul.msk.f32.gmra.mxu0 %vm59_vm0, %v34_v8 }
  0x3d   :  { %665 = vmatmul.msk.f32.gmra.mxu0 %vm59_vm0, %v35_v9 }
  0x45   :  { %666 = vmatmul.msk.f32.gmra.mxu0 %vm59_vm0, %v36_v11 }
  0x4d   :  { %667 = vmatmul.msk.f32.gmra.mxu0 %vm59_vm0, %v37_v13 }
  0x55   :  { %668 = vmatmul.msk.f32.gmra.mxu0 %vm59_vm0, %v38_v15 }
  0x5d   :  { %669 = vmatmul.msk.f32.gmra.mxu0 %vm59_vm0, %v39_v17 }
  0x65   :  { %670 = vmatmul.msk.f32.gmra.mxu0 %vm59_vm0, %v40_v19 }
  0x6d   :  { %671 = vmatmul.msk.f32.gmra.mxu0 %vm59_vm0, %v41_v24 }
  0x75   :  { %672 = vmatmul.msk.f32.gmra.mxu0 %vm59_vm0, %v42_v26 }
  0x7d   :  { %673 = vmatmul.msk.f32.gmra.mxu0 %vm59_vm0, %v43_v27  ;;  %v455_v27 = vld [vmem:[%s1261_s5 + $0x10] sm:$0xff] }
  0x7e   :  { %549 = vmatpush.msra.mxu2 %v455_v27  ;;  %740 = vmatpush.msra.mxu3 %v455_v27 }
  0x82   :  { %v152_v29 = vpop.f32.mrf.mxu0 }
  0x83   :  { %v153_v31 = vadd.f32 %v995_v28, %v152_v29  ;;  %v454_v29 = vld [vmem:[%s1261_s5 + $0x8] sm:$0xff] }
  0x84   :  { %550 = vmatpush.msra.mxu2 %v454_v29  ;;  %741 = vmatpush.msra.mxu3 %v454_v29 }
  0x85   :  { %746 = vtanh.f32 %v153_v31  ;;  %674 = vmatmul.msk.f32.gmra.mxu0 %vm59_vm0, %v44_v30  ;;  %v453_v30 = vld [vmem:[%s1261_s5] sm:$0xff] }
  0x86   :  { %551 = vmatpush.msra.mxu2 %v453_v30  ;;  %742 = vmatpush.msra.mxu3 %v453_v30 }
  0x89   :  { %v209_v58 = vpop.f32.mrf.mxu3 }
  0x8a   :  { %v155_v32 = vpop.f32.mrf.mxu0  ;;  %v210_v59 = vadd.f32 %v995_v28, %v209_v58 }
  0x8b   :  { %v747_v34 = vpop.eup %746  ;;  %v156_v35 = vadd.f32 %v995_v28, %v155_v32 }
  0x8c   :  { %683 = vmatmul.msk.f32.vlgmr.msra.gmra.mxu1 %vm260_vm1, %v747_v34 }
  0x8d   :  { %748 = vtanh.f32 %v156_v35  ;;  %675 = vmatmul.msk.f32.gmra.mxu0 %vm59_vm0, %v45_v33 }
  0x91   :  { %v212_v63 = vpop.f32.mrf.mxu3 }
  0x92   :  { %v158_v36 = vpop.f32.mrf.mxu0  ;;  %v213_v1 = vadd.f32 %v995_v28, %v212_v63 }
  0x93   :  { %v749_v38 = vpop.eup %748  ;;  %v159_v39 = vadd.f32 %v995_v28, %v158_v36 }
  0x94   :  { %684 = vmatmul.msk.f32.gmra.mxu1 %vm260_vm1, %v749_v38 }
  0x95   :  { %750 = vtanh.f32 %v159_v39  ;;  %676 = vmatmul.msk.f32.gmra.mxu0 %vm59_vm0, %v46_v37 }
  0x99   :  { %v215_v5 = vpop.f32.mrf.mxu3 }
  0x9a   :  { %v161_v40 = vpop.f32.mrf.mxu0  ;;  %v216_v7 = vadd.f32 %v995_v28, %v215_v5 }
  0x9b   :  { %v751_v41 = vpop.eup %750  ;;  %v162_v42 = vadd.f32 %v995_v28, %v161_v40 }
  0x9c   :  { %685 = vmatmul.msk.f32.gmra.mxu1 %vm260_vm1, %v751_v41  ;;  %v1069_v41 = vld [vmem:[%s1260_s4] ss:$0 sm:$0xff] }
  0x9d   :  { %752 = vtanh.f32 %v162_v42 }
  0xa1   :  { %v218_v11 = vpop.f32.mrf.mxu3 }
  0xa2   :  { %v164_v43 = vpop.f32.mrf.mxu0  ;;  %v219_v13 = vadd.f32 %v995_v28, %v218_v11 }
  0xa3   :  { %v753_v44 = vpop.eup %752  ;;  %v165_v45 = vadd.f32 %v995_v28, %v164_v43 }
  0xa4   :  { %686 = vmatmul.msk.f32.gmra.mxu1 %vm260_vm1, %v753_v44 }
  0xa5   :  { %754 = vtanh.f32 %v165_v45 }
  0xa9   :  { %v221_v17 = vpop.f32.mrf.mxu3 }
  0xaa   :  { %v167_v46 = vpop.f32.mrf.mxu0  ;;  %v222_v19 = vadd.f32 %v995_v28, %v221_v17 }
  0xab   :  { %v755_v47 = vpop.eup %754  ;;  %v168_v48 = vadd.f32 %v995_v28, %v167_v46 }
  0xac   :  { %687 = vmatmul.msk.f32.gmra.mxu1 %vm260_vm1, %v755_v47 }
  0xad   :  { %756 = vtanh.f32 %v168_v48 }
  0xb1   :  { %v224_v24 = vpop.f32.mrf.mxu3 }
  0xb2   :  { %v170_v49 = vpop.f32.mrf.mxu0  ;;  %v225_v26 = vadd.f32 %v995_v28, %v224_v24 }
  0xb3   :  { %v757_v50 = vpop.eup %756  ;;  %v171_v51 = vadd.f32 %v995_v28, %v170_v49 }
  0xb4   :  { %688 = vmatmul.msk.f32.gmra.mxu1 %vm260_vm1, %v757_v50 }
  0xb5   :  { %758 = vtanh.f32 %v171_v51 }
  0xba   :  { %v173_v52 = vpop.f32.mrf.mxu0 }
  0xbb   :  { %v759_v53 = vpop.eup %758  ;;  %v174_v54 = vadd.f32 %v995_v28, %v173_v52 }
  0xbc   :  { %689 = vmatmul.msk.f32.gmra.mxu1 %vm260_vm1, %v759_v53 }
  0xbd   :  { %760 = vtanh.f32 %v174_v54 }
  0xc2   :  { %v176_v55 = vpop.f32.mrf.mxu0 }
  0xc3   :  { %v761_v56 = vpop.eup %760  ;;  %v177_v57 = vadd.f32 %v995_v28, %v176_v55 }
  0xc4   :  { %690 = vmatmul.msk.f32.gmra.mxu1 %vm260_vm1, %v761_v56 }
  0xc5   :  { %762 = vtanh.f32 %v177_v57 }
  0xc6   :  { %764 = vtanh.f32 %v210_v59 }
  0xca   :  { %v179_v60 = vpop.f32.mrf.mxu0 }
  0xcb   :  { %v763_v61 = vpop.eup %762  ;;  %v180_v62 = vadd.f32 %v995_v28, %v179_v60 }
  0xcc   :  { %691 = vmatmul.msk.f32.gmra.mxu1 %vm260_vm1, %v763_v61  ;;  %v765_v0 = vpop.eup %764 }
  0xcd   :  { %766 = vtanh.f32 %v180_v62  ;;  %702 = vmatmul.msk.f32.vlgmr.msrb.gmra.mxu3 %vm260_vm1, %v765_v0 }
  0xce   :  { %768 = vtanh.f32 %v213_v1 }
  0xd2   :  { %v182_v2 = vpop.f32.mrf.mxu0 }
  0xd3   :  { %v767_v3 = vpop.eup %766  ;;  %v183_v4 = vadd.f32 %v995_v28, %v182_v2 }
  0xd4   :  { %692 = vmatmul.msk.f32.gmra.mxu1 %vm260_vm1, %v767_v3  ;;  %v769_v6 = vpop.eup %768 }
  0xd5   :  { %770 = vtanh.f32 %v183_v4  ;;  %703 = vmatmul.msk.f32.gmra.mxu3 %vm260_vm1, %v769_v6 }
  0xd6   :  { %772 = vtanh.f32 %v216_v7 }
  0xda   :  { %v185_v8 = vpop.f32.mrf.mxu0 }
  0xdb   :  { %v771_v9 = vpop.eup %770  ;;  %v186_v10 = vadd.f32 %v995_v28, %v185_v8 }
  0xdc   :  { %693 = vmatmul.msk.f32.gmra.mxu1 %vm260_vm1, %v771_v9  ;;  %v773_v12 = vpop.eup %772 }
  0xdd   :  { %774 = vtanh.f32 %v186_v10  ;;  %704 = vmatmul.msk.f32.gmra.mxu3 %vm260_vm1, %v773_v12 }
  0xde   :  { %776 = vtanh.f32 %v219_v13 }
  0xe2   :  { %v188_v14 = vpop.f32.mrf.mxu0 }
  0xe3   :  { %v775_v15 = vpop.eup %774  ;;  %v189_v16 = vadd.f32 %v995_v28, %v188_v14 }
  0xe4   :  { %694 = vmatmul.msk.f32.gmra.mxu1 %vm260_vm1, %v775_v15  ;;  %v777_v18 = vpop.eup %776 }
  0xe5   :  { %778 = vtanh.f32 %v189_v16  ;;  %705 = vmatmul.msk.f32.gmra.mxu3 %vm260_vm1, %v777_v18 }
  0xe6   :  { %780 = vtanh.f32 %v222_v19 }
  0xea   :  { %v191_v20 = vpop.f32.mrf.mxu0 }
  0xeb   :  { %v779_v21 = vpop.eup %778  ;;  %v192_v22 = vadd.f32 %v995_v28, %v191_v20 }
  0xec   :  { %695 = vmatmul.msk.f32.gmra.mxu1 %vm260_vm1, %v779_v21  ;;  %v781_v25 = vpop.eup %780 }
  0xed   :  { %782 = vtanh.f32 %v192_v22  ;;  %706 = vmatmul.msk.f32.gmra.mxu3 %vm260_vm1, %v781_v25 }
  0xee   :  { %784 = vtanh.f32 %v225_v26 }
  0xf2   :  { %v194_v31 = vpop.f32.mrf.mxu0 }
  0xf3   :  { %v783_v32 = vpop.eup %782  ;;  %v195_v33 = vadd.f32 %v995_v28, %v194_v31 }
  0xf4   :  { %696 = vmatmul.msk.f32.gmra.mxu1 %vm260_vm1, %v783_v32  ;;  %v785_v34 = vpop.eup %784 }
  0xf5   :  { %786 = vtanh.f32 %v195_v33  ;;  %707 = vmatmul.msk.f32.gmra.mxu3 %vm260_vm1, %v785_v34  ;;  %v12_v34 = vstv %s1262_s6 }
  0xf6   :  { %13 = vst [vmem:[#allocation2] sm:$0x1] %v12_v34 }
  0xfa   :  { %v197_v35 = vpop.f32.mrf.mxu0 }
  0xfb   :  { %v787_v36 = vpop.eup %786  ;;  %v198_v37 = vadd.f32 %v995_v28, %v197_v35 }
  0xfc   :  { %697 = vmatmul.msk.f32.gmra.mxu1 %vm260_vm1, %v787_v36 }
  0xfd   :  { %788 = vtanh.f32 %v198_v37 }
 0x102   :  { %v200_v38 = vpop.f32.mrf.mxu0 }
 0x103   :  { %v789_v39 = vpop.eup %788  ;;  %v201_v40 = vadd.f32 %v995_v28, %v200_v38 }
 0x104   :  { %698 = vmatmul.msk.f32.gmra.mxu1 %vm260_vm1, %v789_v39 }
 0x105   :  { %790 = vtanh.f32 %v201_v40 }
 0x109   :  { %v353_v42 = vpop.f32.mrf.mxu1 }
 0x10a   :  { %v354_v43 = vadd.f32 %v1069_v41, %v353_v42  ;;  %v203_v44 = vpop.f32.mrf.mxu0 }
 0x10b   :  { %v791_v45 = vpop.eup %790  ;;  %v204_v46 = vadd.f32 %v995_v28, %v203_v44 }
 0x10c   :  { %792 = vtanh.f32 %v354_v43  ;;  %699 = vmatmul.msk.f32.gmra.mxu1 %vm260_vm1, %v791_v45 }
 0x10d   :  { %794 = vtanh.f32 %v204_v46 }
 0x111   :  { %v356_v47 = vpop.f32.mrf.mxu1 }
 0x112   :  { %v793_v48 = vpop.eup %792  ;;  %v357_v49 = vadd.f32 %v1069_v41, %v356_v47  ;;  %v206_v50 = vpop.f32.mrf.mxu0 }
 0x113   :  { %v795_v51 = vpop.eup %794  ;;  %v207_v52 = vadd.f32 %v995_v28, %v206_v50  ;;  %708 = vmatmul.msk.f32.vlgmr.msra.gmra.mxu2 %vm260_vm1, %v793_v48 }
 0x114   :  { %796 = vtanh.f32 %v357_v49  ;;  %700 = vmatmul.msk.f32.gmra.mxu1 %vm260_vm1, %v795_v51 }
 0x115   :  { %798 = vtanh.f32 %v207_v52 }
 0x119   :  { %v359_v53 = vpop.f32.mrf.mxu1 }
 0x11a   :  { %v797_v54 = vpop.eup %796  ;;  %v360_v55 = vadd.f32 %v1069_v41, %v359_v53 }
 0x11b   :  { %v799_v56 = vpop.eup %798  ;;  %709 = vmatmul.msk.f32.gmra.mxu2 %vm260_vm1, %v797_v54 }
 0x11c   :  { %800 = vtanh.f32 %v360_v55  ;;  %701 = vmatmul.msk.f32.gmra.mxu1 %vm260_vm1, %v799_v56 }
 0x121   :  { %v362_v57 = vpop.f32.mrf.mxu1 }
 0x122   :  { %v801_v58 = vpop.eup %800  ;;  %v363_v28 = vadd.f32 %v1069_v41, %v362_v57 }
 0x123   :  { %710 = vmatmul.msk.f32.gmra.mxu2 %vm260_vm1, %v801_v58  ;;  %v1126_v58 = vld [vmem:[#allocation2] ss:$0 sm:$0xff] }
 0x124   :  { %802 = vtanh.f32 %v363_v28 }
 0x129   :  { %v365_v59 = vpop.f32.mrf.mxu1 }
 0x12a   :  { %v803_v60 = vpop.eup %802  ;;  %v366_v61 = vadd.f32 %v1069_v41, %v365_v59 }
 0x12b   :  { %711 = vmatmul.msk.f32.gmra.mxu2 %vm260_vm1, %v803_v60 }
 0x12c   :  { %804 = vtanh.f32 %v366_v61 }
 0x131   :  { %v368_v62 = vpop.f32.mrf.mxu1 }
 0x132   :  { %v805_v63 = vpop.eup %804  ;;  %v369_v0 = vadd.f32 %v1069_v41, %v368_v62 }
 0x133   :  { %712 = vmatmul.msk.f32.gmra.mxu2 %vm260_vm1, %v805_v63 }
 0x134   :  { %806 = vtanh.f32 %v369_v0 }
 0x139   :  { %v371_v1 = vpop.f32.mrf.mxu1 }
 0x13a   :  { %v807_v2 = vpop.eup %806  ;;  %v372_v3 = vadd.f32 %v1069_v41, %v371_v1 }
 0x13b   :  { %713 = vmatmul.msk.f32.gmra.mxu2 %vm260_vm1, %v807_v2 }
 0x13c   :  { %808 = vtanh.f32 %v372_v3 }
 0x141   :  { %v374_v4 = vpop.f32.mrf.mxu1 }
 0x142   :  { %v809_v5 = vpop.eup %808  ;;  %v375_v6 = vadd.f32 %v1069_v41, %v374_v4 }
 0x143   :  { %714 = vmatmul.msk.f32.gmra.mxu2 %vm260_vm1, %v809_v5 }
 0x144   :  { %810 = vtanh.f32 %v375_v6 }
 0x149   :  { %v377_v7 = vpop.f32.mrf.mxu1 }
 0x14a   :  { %v811_v8 = vpop.eup %810  ;;  %v378_v9 = vadd.f32 %v1069_v41, %v377_v7 }
 0x14b   :  { %715 = vmatmul.msk.f32.gmra.mxu2 %vm260_vm1, %v811_v8 }
 0x14c   :  { %812 = vtanh.f32 %v378_v9 }
 0x150   :  { %v410_v11 = vpop.f32.mrf.mxu3 }
 0x151   :  { %v380_v10 = vpop.f32.mrf.mxu1  ;;  %v411_v14 = vadd.f32 %v1069_v41, %v410_v11 }
 0x152   :  { %v813_v12 = vpop.eup %812  ;;  %v381_v13 = vadd.f32 %v1069_v41, %v380_v10 }
 0x153   :  { %716 = vmatmul.msk.f32.gmra.mxu2 %vm260_vm1, %v813_v12 }
 0x154   :  { %814 = vtanh.f32 %v381_v13 }
 0x155   :  { %816 = vtanh.f32 %v411_v14 }
 0x158   :  { %v413_v16 = vpop.f32.mrf.mxu3 }
 0x159   :  { %v383_v15 = vpop.f32.mrf.mxu1  ;;  %v414_v19 = vadd.f32 %v1069_v41, %v413_v16 }
 0x15a   :  { %v815_v17 = vpop.eup %814  ;;  %v384_v18 = vadd.f32 %v1069_v41, %v383_v15 }
 0x15b   :  { %v817_v20 = vpop.eup %816  ;;  %717 = vmatmul.msk.f32.gmra.mxu2 %vm260_vm1, %v815_v17 }
 0x15c   :  { %818 = vtanh.f32 %v384_v18  ;;  %727 = vmatmul.msk.f32.vlgmr.msra.gmra.mxu3 %vm260_vm1, %v817_v20 }
 0x15d   :  { %820 = vtanh.f32 %v414_v19 }
 0x160   :  { %v416_v22 = vpop.f32.mrf.mxu3 }
 0x161   :  { %v386_v21 = vpop.f32.mrf.mxu1  ;;  %v417_v25 = vadd.f32 %v1069_v41, %v416_v22 }
 0x162   :  { %v819_v23 = vpop.eup %818  ;;  %v387_v24 = vadd.f32 %v1069_v41, %v386_v21 }
 0x163   :  { %v821_v26 = vpop.eup %820  ;;  %718 = vmatmul.msk.f32.gmra.mxu2 %vm260_vm1, %v819_v23 }
 0x164   :  { %822 = vtanh.f32 %v387_v24  ;;  %728 = vmatmul.msk.f32.gmra.mxu3 %vm260_vm1, %v821_v26 }
 0x165   :  { %824 = vtanh.f32 %v417_v25 }
 0x168   :  { %v419_v29 = vpop.f32.mrf.mxu3 }
 0x169   :  { %v389_v27 = vpop.f32.mrf.mxu1  ;;  %v420_v32 = vadd.f32 %v1069_v41, %v419_v29 }
 0x16a   :  { %v823_v30 = vpop.eup %822  ;;  %v390_v31 = vadd.f32 %v1069_v41, %v389_v27 }
 0x16b   :  { %v825_v33 = vpop.eup %824  ;;  %719 = vmatmul.msk.f32.gmra.mxu2 %vm260_vm1, %v823_v30 }
 0x16c   :  { %826 = vtanh.f32 %v390_v31  ;;  %729 = vmatmul.msk.f32.gmra.mxu3 %vm260_vm1, %v825_v33 }
 0x16d   :  { %828 = vtanh.f32 %v420_v32 }
 0x170   :  { %v422_v36 = vpop.f32.mrf.mxu3 }
 0x171   :  { %v392_v35 = vpop.f32.mrf.mxu1  ;;  %v423_v39 = vadd.f32 %v1069_v41, %v422_v36 }
 0x172   :  { %v827_v37 = vpop.eup %826  ;;  %v393_v38 = vadd.f32 %v1069_v41, %v392_v35 }
 0x173   :  { %v829_v40 = vpop.eup %828  ;;  %720 = vmatmul.msk.f32.gmra.mxu2 %vm260_vm1, %v827_v37 }
 0x174   :  { %830 = vtanh.f32 %v393_v38  ;;  %730 = vmatmul.msk.f32.gmra.mxu3 %vm260_vm1, %v829_v40 }
 0x175   :  { %832 = vtanh.f32 %v423_v39 }
 0x178   :  { %v425_v43 = vpop.f32.mrf.mxu3 }
 0x179   :  { %v395_v42 = vpop.f32.mrf.mxu1  ;;  %v426_v46 = vadd.f32 %v1069_v41, %v425_v43 }
 0x17a   :  { %v831_v44 = vpop.eup %830  ;;  %v396_v45 = vadd.f32 %v1069_v41, %v395_v42 }
 0x17b   :  { %v833_v47 = vpop.eup %832  ;;  %721 = vmatmul.msk.f32.gmra.mxu2 %vm260_vm1, %v831_v44 }
 0x17c   :  { %834 = vtanh.f32 %v396_v45  ;;  %731 = vmatmul.msk.f32.gmra.mxu3 %vm260_vm1, %v833_v47 }
 0x17d   :  { %836 = vtanh.f32 %v426_v46 }
 0x181   :  { %v398_v48 = vpop.f32.mrf.mxu1 }
 0x182   :  { %v835_v49 = vpop.eup %834  ;;  %v399_v50 = vadd.f32 %v1069_v41, %v398_v48 }
 0x183   :  { %v837_v51 = vpop.eup %836  ;;  %722 = vmatmul.msk.f32.gmra.mxu2 %vm260_vm1, %v835_v49 }
 0x184   :  { %838 = vtanh.f32 %v399_v50  ;;  %732 = vmatmul.msk.f32.gmra.mxu3 %vm260_vm1, %v837_v51 }
 0x189   :  { %v401_v52 = vpop.f32.mrf.mxu1 }
 0x18a   :  { %v839_v53 = vpop.eup %838  ;;  %v402_v54 = vadd.f32 %v1069_v41, %v401_v52 }
 0x18b   :  { %723 = vmatmul.msk.f32.gmra.mxu2 %vm260_vm1, %v839_v53 }
 0x18c   :  { %840 = vtanh.f32 %v402_v54 }
 0x191   :  { %v404_v55 = vpop.f32.mrf.mxu1 }
 0x192   :  { %v841_v56 = vpop.eup %840  ;;  %v405_v57 = vadd.f32 %v1069_v41, %v404_v55 }
 0x193   :  { %724 = vmatmul.msk.f32.gmra.mxu2 %vm260_vm1, %v841_v56 }
 0x194   :  { %842 = vtanh.f32 %v405_v57 }
 0x196   :  { %v553_v28 = vpop.f32.mrf.mxu2 }
 0x197   :  { %v554_v59 = vadd.f32 %v1126_v58, %v553_v28 }
 0x199   :  { %629 = vst.msk [vmem:[%s1263_s7] sm:$0xff] %vm628_vm2, %v554_v59  ;;  %v407_v60 = vpop.f32.mrf.mxu1 }
 0x19a   :  { %v843_v61 = vpop.eup %842  ;;  %v408_v62 = vadd.f32 %v1069_v41, %v407_v60 }
 0x19b   :  { %725 = vmatmul.msk.f32.gmra.mxu2 %vm260_vm1, %v843_v61 }
 0x19c   :  { %844 = vtanh.f32 %v408_v62 }
 0x19e   :  { %v556_v63 = vpop.f32.mrf.mxu2 }
 0x19f   :  { %v557_v0 = vadd.f32 %v1126_v58, %v556_v63 }
 0x1a1   :  { %630 = vst.msk [vmem:[%s1263_s7 + $0x8] sm:$0xff] %vm628_vm2, %v557_v0 }
 0x1a2   :  { %v845_v1 = vpop.eup %844 }
 0x1a3   :  { %726 = vmatmul.msk.f32.gmra.mxu2 %vm260_vm1, %v845_v1 }
 0x1a6   :  { %v559_v2 = vpop.f32.mrf.mxu2 }
 0x1a7   :  { %v560_v3 = vadd.f32 %v1126_v58, %v559_v2 }
 0x1a9   :  { %631 = vst.msk [vmem:[%s1263_s7 + $0x10] sm:$0xff] %vm628_vm2, %v560_v3 }
 0x1ae   :  { %v562_v41 = vpop.f32.mrf.mxu2 }
 0x1af   :  { %v563_v4 = vadd.f32 %v1126_v58, %v562_v41 }
 0x1b1   :  { %632 = vst.msk [vmem:[%s1263_s7 + $0x18] sm:$0xff] %vm628_vm2, %v563_v4 }
 0x1b6   :  { %v565_v5 = vpop.f32.mrf.mxu2 }
 0x1b7   :  { %v566_v6 = vadd.f32 %v1126_v58, %v565_v5 }
 0x1b9   :  { %633 = vst.msk [vmem:[%s1263_s7 + $0x20] sm:$0xff] %vm628_vm2, %v566_v6 }
 0x1be   :  { %v568_v7 = vpop.f32.mrf.mxu2 }
 0x1bf   :  { %v569_v8 = vadd.f32 %v1126_v58, %v568_v7 }
 0x1c1   :  { %634 = vst.msk [vmem:[%s1263_s7 + $0x28] sm:$0xff] %vm628_vm2, %v569_v8 }
 0x1c6   :  { %v571_v9 = vpop.f32.mrf.mxu2 }
 0x1c7   :  { %v572_v10 = vadd.f32 %v1126_v58, %v571_v9 }
 0x1c9   :  { %635 = vst.msk [vmem:[%s1263_s7 + $0x30] sm:$0xff] %vm628_vm2, %v572_v10 }
 0x1ce   :  { %v574_v11 = vpop.f32.mrf.mxu2 }
 0x1cf   :  { %v575_v12 = vadd.f32 %v1126_v58, %v574_v11 }
 0x1d1   :  { %636 = vst.msk [vmem:[%s1263_s7 + $0x38] sm:$0xff] %vm628_vm2, %v575_v12 }
 0x1d6   :  { %v577_v13 = vpop.f32.mrf.mxu2 }
 0x1d7   :  { %v578_v14 = vadd.f32 %v1126_v58, %v577_v13 }
 0x1d9   :  { %637 = vst.msk [vmem:[%s1263_s7 + $0x40] sm:$0xff] %vm628_vm2, %v578_v14 }
 0x1de   :  { %v580_v15 = vpop.f32.mrf.mxu2 }
 0x1df   :  { %v581_v16 = vadd.f32 %v1126_v58, %v580_v15  ;;  %v610_v17 = vpop.f32.mrf.mxu3 }
 0x1e0   :  { %v611_v18 = vadd.f32 %v1126_v58, %v610_v17 }
 0x1e1   :  { %638 = vst.msk [vmem:[%s1263_s7 + $0x48] sm:$0xff] %vm628_vm2, %v581_v16 }
 0x1e2   :  { %648 = vst.msk [vmem:[%s1263_s7 + $0x98] sm:$0xff] %vm628_vm2, %v611_v18 }
 0x1e6   :  { %v583_v19 = vpop.f32.mrf.mxu2 }
 0x1e7   :  { %v584_v20 = vadd.f32 %v1126_v58, %v583_v19  ;;  %v613_v21 = vpop.f32.mrf.mxu3 }
 0x1e8   :  { %v614_v22 = vadd.f32 %v1126_v58, %v613_v21 }
 0x1e9   :  { %639 = vst.msk [vmem:[%s1263_s7 + $0x50] sm:$0xff] %vm628_vm2, %v584_v20 }
 0x1ea   :  { %649 = vst.msk [vmem:[%s1263_s7 + $0xa0] sm:$0xff] %vm628_vm2, %v614_v22 }
 0x1ee   :  { %v586_v23 = vpop.f32.mrf.mxu2 }
 0x1ef   :  { %v587_v24 = vadd.f32 %v1126_v58, %v586_v23  ;;  %v616_v25 = vpop.f32.mrf.mxu3 }
 0x1f0   :  { %v617_v26 = vadd.f32 %v1126_v58, %v616_v25 }
 0x1f1   :  { %640 = vst.msk [vmem:[%s1263_s7 + $0x58] sm:$0xff] %vm628_vm2, %v587_v24 }
 0x1f2   :  { %650 = vst.msk [vmem:[%s1263_s7 + $0xa8] sm:$0xff] %vm628_vm2, %v617_v26 }
 0x1f6   :  { %v589_v27 = vpop.f32.mrf.mxu2 }
 0x1f7   :  { %v590_v29 = vadd.f32 %v1126_v58, %v589_v27  ;;  %v619_v30 = vpop.f32.mrf.mxu3 }
 0x1f8   :  { %v620_v31 = vadd.f32 %v1126_v58, %v619_v30 }
 0x1f9   :  { %641 = vst.msk [vmem:[%s1263_s7 + $0x60] sm:$0xff] %vm628_vm2, %v590_v29 }
 0x1fa   :  { %651 = vst.msk [vmem:[%s1263_s7 + $0xb0] sm:$0xff] %vm628_vm2, %v620_v31 }
 0x1fe   :  { %v592_v32 = vpop.f32.mrf.mxu2 }
 0x1ff   :  { %v593_v33 = vadd.f32 %v1126_v58, %v592_v32  ;;  %v622_v34 = vpop.f32.mrf.mxu3 }
 0x200   :  { %v623_v35 = vadd.f32 %v1126_v58, %v622_v34 }
 0x201   :  { %642 = vst.msk [vmem:[%s1263_s7 + $0x68] sm:$0xff] %vm628_vm2, %v593_v33 }
 0x202   :  { %652 = vst.msk [vmem:[%s1263_s7 + $0xb8] sm:$0xff] %vm628_vm2, %v623_v35 }
 0x206   :  { %v595_v36 = vpop.f32.mrf.mxu2 }
 0x207   :  { %v596_v37 = vadd.f32 %v1126_v58, %v595_v36  ;;  %v625_v38 = vpop.f32.mrf.mxu3 }
 0x208   :  { %v626_v39 = vadd.f32 %v1126_v58, %v625_v38 }
 0x209   :  { %643 = vst.msk [vmem:[%s1263_s7 + $0x70] sm:$0xff] %vm628_vm2, %v596_v37 }
 0x20a   :  { %653 = vst.msk [vmem:[%s1263_s7 + $0xc0] sm:$0xff] %vm628_vm2, %v626_v39 }
 0x20e   :  { %v598_v40 = vpop.f32.mrf.mxu2 }
 0x20f   :  { %v599_v42 = vadd.f32 %v1126_v58, %v598_v40 }
 0x211   :  { %644 = vst.msk [vmem:[%s1263_s7 + $0x78] sm:$0xff] %vm628_vm2, %v599_v42 }
 0x216   :  { %v601_v43 = vpop.f32.mrf.mxu2 }
 0x217   :  { %v602_v44 = vadd.f32 %v1126_v58, %v601_v43 }
 0x219   :  { %645 = vst.msk [vmem:[%s1263_s7 + $0x80] sm:$0xff] %vm628_vm2, %v602_v44 }
 0x21e   :  { %v604_v45 = vpop.f32.mrf.mxu2 }
 0x21f   :  { %v605_v46 = vadd.f32 %v1126_v58, %v604_v45 }
 0x221   :  { %646 = vst.msk [vmem:[%s1263_s7 + $0x88] sm:$0xff] %vm628_vm2, %v605_v46 }
 0x226   :  { %v607_v47 = vpop.f32.mrf.mxu2 }
 0x227   :  { %v608_v48 = vadd.f32 %v1126_v58, %v607_v47 }
 0x229   :  { %647 = vst.msk [vmem:[%s1263_s7 + $0x90] sm:$0xff] %vm628_vm2, %v608_v48 }

</bundles_post_ra>
